<compile_context>
chip_gen: v6e
topology: v6e:2x2x1
jax: 0.10.0
libtpu: 0.0.40
codegen_flags: <defaults>
</compile_context>

<pallas_src>
import functools

import jax
import jax.numpy as jnp
from jax import lax
from jax.experimental import pallas as pl
from jax.experimental.pallas import tpu as pltpu

LANE = 128      # TPU lane width; FC hidden sizes are padded to this.
K_FC1 = 5632    # fc1 in_features (= 64 * 8 * 11).
TK = 1408       # fc1 K-tile (5632 = 4 * 1408); multiple of 128.


# ---------------------------------------------------------------------------
# Fused FC stack: relu(relu(x@W1+b1)@W2+b2)@W3+b3, K-tiled over fc1's K dim.
# ---------------------------------------------------------------------------
def _fc_stack_kernel(x_ref, w1_ref, b_ref, w23_ref, o_ref, acc_ref):
    k = pl.program_id(0)

    @pl.when(k == 0)
    def _():
        acc_ref[...] = jnp.zeros_like(acc_ref)

    # Partial fc1 product for this K-tile; f32 accumulation on the MXU.
    acc_ref[...] += jnp.dot(x_ref[...], w1_ref[...],
                            preferred_element_type=jnp.float32)

    @pl.when(k == pl.num_programs(0) - 1)
    def _():
        b = b_ref[...]                                   # (3, 128) f32
        h = jnp.maximum(acc_ref[...] + b[0:1, :], 0.0).astype(jnp.bfloat16)
        h = jnp.dot(h, w23_ref[0], preferred_element_type=jnp.float32)
        h = jnp.maximum(h + b[1:2, :], 0.0).astype(jnp.bfloat16)
        y = jnp.dot(h, w23_ref[1], preferred_element_type=jnp.float32)
        o_ref[...] = (y + b[2:3, :]).astype(o_ref.dtype)  # lane-dense store


def fc_stack(x, w1, b_packed, w23):
    """x:(B,5632) bf16, w1:(5632,128) bf16, b_packed:(3,128) f32 (b1;b2;b3),
    w23:(2,128,128) bf16 (zero-padded w2, w3).  Returns (B,128) f32; the
    caller slices [:, :action_size].

    At B=2 a batch grid only adds overhead; when reused for replay-buffer
    batches (B >= 128), add a leading "parallel" M axis with Tm a multiple of
    16 and keep the weight index_maps constant so weights are read once per
    batch (and both v7x TensorCores get used).
    """
    B, K = x.shape
    assert K % TK == 0 and TK % LANE == 0, (K, TK)
    return pl.pallas_call(
        _fc_stack_kernel,
        out_shape=jax.ShapeDtypeStruct((B, LANE), jnp.float32),
        grid_spec=pltpu.PrefetchScalarGridSpec(
            num_scalar_prefetch=0,
            grid=(K // TK,),
            in_specs=[
                pl.BlockSpec((B, TK), lambda k: (0, k)),            # x K-tiles
                pl.BlockSpec((TK, LANE), lambda k: (k, 0)),         # fc1_w K-tiles
                pl.BlockSpec((3, LANE), lambda k: (0, 0)),          # biases (resident)
                pl.BlockSpec((2, LANE, LANE), lambda k: (0, 0, 0)),  # w2|w3 (resident)
            ],
            out_specs=pl.BlockSpec((B, LANE), lambda k: (0, 0)),    # resident across k
            scratch_shapes=[pltpu.VMEM((B, LANE), jnp.float32)],
        ),
        compiler_params=pltpu.CompilerParams(
            dimension_semantics=("arbitrary",),
            vmem_limit_bytes=4 * 1024 * 1024),
    )(x, w1, b_packed, w23)


# ---------------------------------------------------------------------------
# Conv2d (valid padding) + ReLU, NHWC, bf16 weights, f32 accumulation.
# TODO(synk): the three convs (<1 MFLOP each, odd spatial sizes) stay in XLA;
# an in-kernel NHWC conv would allow full single-launch fusion (v7x launch-
# overhead win) but adds lowering risk for negligible compute gain here.
# ---------------------------------------------------------------------------
def conv2d_relu_nhwc(x, w_hwio, b, stride):
    y = lax.conv_general_dilated(
        x, w_hwio, window_strides=(stride, stride), padding="VALID",
        dimension_numbers=("NHWC", "HWIO", "NHWC"),
        preferred_element_type=jnp.float32)
    y = jnp.maximum(y + b[None, None, None, :], 0.0)
    return y.astype(jnp.bfloat16)


# ---------------------------------------------------------------------------
# Parameters: deterministic synthetic init in PyTorch layouts, then a one-time
# conversion to the kernel-friendly layout.
# ---------------------------------------------------------------------------
def init_params_torch_layout(key, action_size):
    """PyTorch-default-like uniform(-1/sqrt(fan_in)); conv OIHW, linear (out,in)."""
    def uni(k, shape, fan_in):
        bound = 1.0 / float(fan_in) ** 0.5
        return jax.random.uniform(k, shape, jnp.float32, -bound, bound)

    ks = jax.random.split(key, 12)
    return {
        "conv1_w": uni(ks[0], (16, 1, 3, 3), 1 * 9),
        "conv1_b": uni(ks[1], (16,), 1 * 9),
        "conv2_w": uni(ks[2], (32, 16, 3, 3), 16 * 9),
        "conv2_b": uni(ks[3], (32,), 16 * 9),
        "conv3_w": uni(ks[4], (64, 32, 3, 3), 32 * 9),
        "conv3_b": uni(ks[5], (64,), 32 * 9),
        "fc1_w": uni(ks[6], (128, K_FC1), K_FC1),
        "fc1_b": uni(ks[7], (128,), K_FC1),
        "fc2_w": uni(ks[8], (64, 128), 128),
        "fc2_b": uni(ks[9], (64,), 128),
        "fc3_w": uni(ks[10], (action_size, 64), 64),
        "fc3_b": uni(ks[11], (action_size,), 64),
    }


def prepare_params(tp, conv3_out_hwc):
    """One-time conversion of PyTorch-layout params:
       * conv weights OIHW -> HWIO, cast to bf16,
       * fc1 rows permuted from NCHW-flatten order (c,h,w) to NHWC order
         (h,w,c) so no per-forward activation transposes are needed,
       * b1/b2/b3 packed into one (3,128) f32 operand,
       * w2/w3 zero-padded to 128x128 and stacked into one (2,128,128) bf16
         operand (padded output columns are exactly 0 before the [:, :A] slice).
    """
    H3, W3, C3 = conv3_out_hwc
    K = tp["fc1_w"].shape[1]
    A = tp["fc3_w"].shape[0]
    # A mismatch here would silently scramble the fc1 row permutation.
    assert H3 * W3 * C3 == K, (H3, W3, C3, K)
    assert tp["fc1_w"].shape[0] == LANE

    def conv_w(w):                                       # OIHW -> HWIO
        return jnp.transpose(w, (2, 3, 1, 0)).astype(jnp.bfloat16)

    # fc1: (128, 5632) -> (5632, 128); reorder rows (c,h,w) -> (h,w,c).
    w1 = tp["fc1_w"].T
    w1 = (w1.reshape(C3, H3, W3, LANE)
             .transpose(1, 2, 0, 3)
             .reshape(H3 * W3 * C3, LANE)).astype(jnp.bfloat16)

    def pad_vec(v):
        return jnp.pad(v, (0, LANE - v.shape[0]))

    b_packed = jnp.stack(
        [tp["fc1_b"], pad_vec(tp["fc2_b"]), pad_vec(tp["fc3_b"])],
        axis=0).astype(jnp.float32)                      # (3, 128)

    w2 = jnp.pad(tp["fc2_w"].T, ((0, 0), (0, LANE - 64)))        # (128, 128)
    w3 = jnp.pad(tp["fc3_w"].T, ((0, LANE - 64), (0, LANE - A)))  # (128, 128)
    w23 = jnp.stack([w2, w3], axis=0).astype(jnp.bfloat16)        # (2, 128, 128)

    return {
        "conv1_w": conv_w(tp["conv1_w"]), "conv1_b": tp["conv1_b"],
        "conv2_w": conv_w(tp["conv2_w"]), "conv2_b": tp["conv2_b"],
        "conv3_w": conv_w(tp["conv3_w"]), "conv3_b": tp["conv3_b"],
        "fc1_w": w1, "fc_b": b_packed, "fc_w23": w23,
    }


# ---------------------------------------------------------------------------
# Forward pass (mirrors DQN.forward; input is PyTorch NCHW f32).
# ---------------------------------------------------------------------------
def dqn_forward(params, x, *, action_size):
    B = x.shape[0]
    # NCHW -> NHWC: Cin == 1, so this is a pure reshape (no data movement).
    x = x.reshape(B, x.shape[2], x.shape[3], 1).astype(jnp.bfloat16)
    x = conv2d_relu_nhwc(x, params["conv1_w"], params["conv1_b"], stride=4)
    x = conv2d_relu_nhwc(x, params["conv2_w"], params["conv2_b"], stride=2)
    x = conv2d_relu_nhwc(x, params["conv3_w"], params["conv3_b"], stride=1)
    x = x.reshape(B, -1)          # NHWC flatten; fc1_w rows pre-permuted to match
    y = fc_stack(x, params["fc1_w"], params["fc_b"], params["fc_w23"])
    return y[:, :action_size]


# ---------------------------------------------------------------------------
# Pure-f32 reference in PyTorch layouts (validates the fc1 row permutation,
# the bias/weight packing, and the zero-padding of w2/w3).
# ---------------------------------------------------------------------------
def dqn_reference_f32(tp, x):
    def conv(x, w, b, s):
        y = lax.conv_general_dilated(
            x, w, window_strides=(s, s), padding="VALID",
            dimension_numbers=("NCHW", "OIHW", "NCHW"))
        return jnp.maximum(y + b[None, :, None, None], 0.0)
    x = conv(x, tp["conv1_w"], tp["conv1_b"], 4)
    x = conv(x, tp["conv2_w"], tp["conv2_b"], 2)
    x = conv(x, tp["conv3_w"], tp["conv3_b"], 1)
    x = x.reshape(x.shape[0], -1)                 # NCHW flatten, like torch
    x = jnp.maximum(x @ tp["fc1_w"].T + tp["fc1_b"], 0.0)
    x = jnp.maximum(x @ tp["fc2_w"].T + tp["fc2_b"], 0.0)
    return x @ tp["fc3_w"].T + tp["fc3_b"]


if __name__ == "__main__":
    # fc1.in_features = 5632 = 64*8*11 constrains the input spatial size:
    # (B,1,84,110) -conv1/4-> (B,16,21,27) -conv2/2-> (B,32,10,13)
    #              -conv3/1-> (B,64,8,11)  -flatten-> (B,5632)
    action_size = 5
    key = jax.random.PRNGKey(0)
    kx, kp = jax.random.split(key)
    x = jax.random.normal(kx, (2, 1, 84, 110), jnp.float32)
    torch_params = init_params_torch_layout(kp, action_size)
    params = prepare_params(torch_params, conv3_out_hwc=(8, 11, 64))

    fwd = jax.jit(functools.partial(dqn_forward, action_size=action_size))
    out = jax.block_until_ready(fwd(params, x))

    assert out.shape == (2, action_size), out.shape
    assert out.dtype == jnp.float32
    assert bool(jnp.all(jnp.isfinite(out)))

    # Tolerance-asserted f32 reference: bf16 weights/activations in the kernel
    # path give ~1e-2 relative error, acceptable for DQN Q-values.
    ref = dqn_reference_f32(torch_params, x)
    err = float(jnp.max(jnp.abs(out - ref)))
    scale = float(jnp.max(jnp.abs(ref)))
    assert err <= 0.05 * scale + 2e-3, (err, scale)

    print("KERNEL_OK")
</pallas_src>

<mosaic_0001>
module attributes {stable_mosaic.version = 11 : i64} {
  func.func @_fc_stack_kernel(%arg0: i32, %arg1: memref<2x1408xbf16, #tpu.memory_space<vmem>>, %arg2: memref<1408x128xbf16, #tpu.memory_space<vmem>>, %arg3: memref<3x128xf32, #tpu.memory_space<vmem>>, %arg4: memref<2x128x128xbf16, #tpu.memory_space<vmem>>, %arg5: memref<2x128xf32, #tpu.memory_space<vmem>>, %arg6: memref<2x128xf32, #tpu.memory_space<vmem>>) attributes {dimension_semantics = [#tpu.dimension_semantics<arbitrary>], iteration_bounds = array<i64: 4>, scalar_prefetch = 0 : i64, scratch_operands = 1 : i64, tpu.core_type = #tpu.core_type<tc>, window_params = [{transform_indices = @transform_0, window_bounds = array<i64: 2, 1408>}, {transform_indices = @transform_1, window_bounds = array<i64: 1408, 128>}, {pipeline_mode = #tpu.pipeline_mode<synchronous>, transform_indices = @transform_2, window_bounds = array<i64: 3, 128>}, {pipeline_mode = #tpu.pipeline_mode<synchronous>, transform_indices = @transform_3, window_bounds = array<i64: 2, 128, 128>}, {pipeline_mode = #tpu.pipeline_mode<synchronous>, transform_indices = @transform_4, window_bounds = array<i64: 2, 128>}]} {
    %c0_i32 = arith.constant 0 : i32
    %0 = arith.cmpi eq, %arg0, %c0_i32 : i32
    %1 = arith.extui %0 : i1 to i32
    %c0_i32_0 = arith.constant 0 : i32
    %2 = arith.cmpi ne, %1, %c0_i32_0 : i32
    scf.if %2 {
      %cst_9 = arith.constant 0.000000e+00 : f32
      %12 = vector.broadcast %cst_9 : f32 to vector<2x128xf32>
      %c0_10 = arith.constant 0 : index
      %c0_11 = arith.constant 0 : index
      %13 = vector.load %arg6[%c0_10, %c0_11] : memref<2x128xf32, #tpu.memory_space<vmem>>, vector<2x128xf32>
      tpu.vector_store %arg6[%c0_10, %c0_11], %12 {strides = array<i32>} : memref<2x128xf32, #tpu.memory_space<vmem>>, vector<2x128xf32>,
    } else {
    }
    %c0 = arith.constant 0 : index
    %c0_1 = arith.constant 0 : index
    %3 = vector.load %arg6[%c0, %c0_1] : memref<2x128xf32, #tpu.memory_space<vmem>>, vector<2x128xf32>
    %c0_2 = arith.constant 0 : index
    %c0_3 = arith.constant 0 : index
    %4 = vector.load %arg1[%c0_2, %c0_3] : memref<2x1408xbf16, #tpu.memory_space<vmem>>, vector<2x1408xbf16>
    %c0_4 = arith.constant 0 : index
    %c0_5 = arith.constant 0 : index
    %5 = vector.load %arg2[%c0_4, %c0_5] : memref<1408x128xbf16, #tpu.memory_space<vmem>>, vector<1408x128xbf16>
    %cst = arith.constant dense<0.000000e+00> : vector<2x128xf32>
    %6 = tpu.matmul %4, %5, %cst {dimension_numbers = #tpu.dot_dimension_numbers<[1], [0], [0], [1], [0, 0, 1, 1], [], []>} : vector<2x1408xbf16>, vector<1408x128xbf16>, vector<2x128xf32> -> vector<2x128xf32>
    %7 = arith.addf %3, %6 : vector<2x128xf32>
    %c0_6 = arith.constant 0 : index
    %c0_7 = arith.constant 0 : index
    %8 = vector.load %arg6[%c0_6, %c0_7] : memref<2x128xf32, #tpu.memory_space<vmem>>, vector<2x128xf32>
    tpu.vector_store %arg6[%c0_6, %c0_7], %7 {strides = array<i32>} : memref<2x128xf32, #tpu.memory_space<vmem>>, vector<2x128xf32>,
    %c3_i32 = arith.constant 3 : i32
    %9 = arith.cmpi eq, %arg0, %c3_i32 : i32
    %10 = arith.extui %9 : i1 to i32
    %c0_i32_8 = arith.constant 0 : i32
    %11 = arith.cmpi ne, %10, %c0_i32_8 : i32
    scf.if %11 {
      %c0_9 = arith.constant 0 : index
      %c0_10 = arith.constant 0 : index
      %12 = vector.load %arg3[%c0_9, %c0_10] : memref<3x128xf32, #tpu.memory_space<vmem>>, vector<3x128xf32>
      %c0_11 = arith.constant 0 : index
      %c0_12 = arith.constant 0 : index
      %13 = vector.load %arg6[%c0_11, %c0_12] : memref<2x128xf32, #tpu.memory_space<vmem>>, vector<2x128xf32>
      %14 = vector.extract_strided_slice %12 {offsets = [0, 0], sizes = [1, 128], strides = [1, 1]} : vector<3x128xf32> to vector<1x128xf32>
      %15 = vector.broadcast %14 : vector<1x128xf32> to vector<2x128xf32>
      %16 = arith.addf %13, %15 : vector<2x128xf32>
      %cst_13 = arith.constant 0.000000e+00 : f32
      %17 = vector.broadcast %cst_13 : f32 to vector<2x128xf32>
      %18 = arith.maximumf %16, %17 : vector<2x128xf32>
      %19 = arith.truncf %18 : vector<2x128xf32> to vector<2x128xbf16>
      %c0_14 = arith.constant 0 : index
      %c0_15 = arith.constant 0 : index
      %c0_16 = arith.constant 0 : index
      %20 = vector.load %arg4[%c0_14, %c0_15, %c0_16] : memref<2x128x128xbf16, #tpu.memory_space<vmem>>, vector<1x128x128xbf16>
      %21 = vector.shape_cast %20 : vector<1x128x128xbf16> to vector<128x128xbf16>
      %cst_17 = arith.constant dense<0.000000e+00> : vector<2x128xf32>
      %22 = tpu.matmul %19, %21, %cst_17 {dimension_numbers = #tpu.dot_dimension_numbers<[1], [0], [0], [1], [0, 0, 1, 1], [], []>} : vector<2x128xbf16>, vector<128x128xbf16>, vector<2x128xf32> -> vector<2x128xf32>
      %23 = vector.extract_strided_slice %12 {offsets = [1, 0], sizes = [1, 128], strides = [1, 1]} : vector<3x128xf32> to vector<1x128xf32>
      %24 = vector.broadcast %23 : vector<1x128xf32> to vector<2x128xf32>
      %25 = arith.addf %22, %24 : vector<2x128xf32>
      %cst_18 = arith.constant 0.000000e+00 : f32
      %26 = vector.broadcast %cst_18 : f32 to vector<2x128xf32>
      %27 = arith.maximumf %25, %26 : vector<2x128xf32>
      %28 = arith.truncf %27 : vector<2x128xf32> to vector<2x128xbf16>
      %c1 = arith.constant 1 : index
      %c0_19 = arith.constant 0 : index
      %c0_20 = arith.constant 0 : index
      %29 = vector.load %arg4[%c1, %c0_19, %c0_20] : memref<2x128x128xbf16, #tpu.memory_space<vmem>>, vector<1x128x128xbf16>
      %30 = vector.shape_cast %29 : vector<1x128x128xbf16> to vector<128x128xbf16>
      %cst_21 = arith.constant dense<0.000000e+00> : vector<2x128xf32>
      %31 = tpu.matmul %28, %30, %cst_21 {dimension_numbers = #tpu.dot_dimension_numbers<[1], [0], [0], [1], [0, 0, 1, 1], [], []>} : vector<2x128xbf16>, vector<128x128xbf16>, vector<2x128xf32> -> vector<2x128xf32>
      %32 = vector.extract_strided_slice %12 {offsets = [2, 0], sizes = [1, 128], strides = [1, 1]} : vector<3x128xf32> to vector<1x128xf32>
      %33 = vector.broadcast %32 : vector<1x128xf32> to vector<2x128xf32>
      %34 = arith.addf %31, %33 : vector<2x128xf32>
      %c0_22 = arith.constant 0 : index
      %c0_23 = arith.constant 0 : index
      %35 = vector.load %arg5[%c0_22, %c0_23] : memref<2x128xf32, #tpu.memory_space<vmem>>, vector<2x128xf32>
      tpu.vector_store %arg5[%c0_22, %c0_23], %34 {strides = array<i32>} : memref<2x128xf32, #tpu.memory_space<vmem>>, vector<2x128xf32>,
    } else {
    }
    return
  }
  func.func @transform_0(%arg0: i32) -> (i32, i32) {
    %c0_i32 = arith.constant 0 : i32
    %c0_i32_0 = arith.constant 0 : i32
    return %c0_i32, %arg0 : i32, i32
  }
  func.func @transform_1(%arg0: i32) -> (i32, i32) {
    %c0_i32 = arith.constant 0 : i32
    %c0_i32_0 = arith.constant 0 : i32
    return %arg0, %c0_i32 : i32, i32
  }
  func.func @transform_2(%arg0: i32) -> (i32, i32) {
    %c0_i32 = arith.constant 0 : i32
    %c0_i32_0 = arith.constant 0 : i32
    %c0_i32_1 = arith.constant 0 : i32
    return %c0_i32, %c0_i32_0 : i32, i32
  }
  func.func @transform_3(%arg0: i32) -> (i32, i32, i32) {
    %c0_i32 = arith.constant 0 : i32
    %c0_i32_0 = arith.constant 0 : i32
    %c0_i32_1 = arith.constant 0 : i32
    %c0_i32_2 = arith.constant 0 : i32
    return %c0_i32, %c0_i32_0, %c0_i32_1 : i32, i32, i32
  }
  func.func @transform_4(%arg0: i32) -> (i32, i32) {
    %c0_i32 = arith.constant 0 : i32
    %c0_i32_0 = arith.constant 0 : i32
    %c0_i32_1 = arith.constant 0 : i32
    return %c0_i32, %c0_i32_0 : i32, i32
  }
}

</mosaic_0001>

<bundles_post_ra>
// kernel: dqn_forward.1
= control target key start
LH: loop header
LB: loop body
LE: loop exit
PB: predicated region body
PF: predicated region fallthrough
CT: control target
= control target key end

     0   :  { %9 = vsyncpa [#allocation4], 0  ;;  %s2056_s15 = smov 0   ;;  %s2257_s0 = inlined_call_operand.vmem [shape: bf16[2,5632], index: 0, kind: input, shape index: {}]   ;;  %s2258_s1 = inlined_call_operand.vmem [shape: bf16[5632,128], index: 1, kind: input, shape index: {}]   ;;  %s2259_s2 = inlined_call_operand.vmem [shape: f32[3,128], index: 2, kind: input, shape index: {}]   ;;  %s2260_s3 = inlined_call_operand.vmem [shape: bf16[2,128,128], index: 3, kind: input, shape index: {}]   ;;  %s2261_s4 = inlined_call_operand.hbm [shape: f32[2,128], index: 4, kind: output, shape index: {}]  }
   0x1 LB: > { %s2062_s16 = sadd.s32 4294967295, %s2022_s15   ;;  %p1536_p0 = scmp.ge.s32.totalorder %s2022_s15, 1  ;;  %s2022_s15 = sphi %s2056_s15, %s15_s15  }
   0x2   : > { %p169_p1 = scmp.lt.s32.totalorder %s2022_s15, 5 }
   0x4   : > { %p170_p2 = pnand %p1536_p0, %p169_p1 }
   0x5   : > { %s194_s17 = smul.u32 (!%p170_p2), 11, %s2062_s16  ;;  %p1538_p5 = scmp.ne.s32.totalorder (!%p170_p2), %s2062_s16, 0 }
   0x6   : > { %173 = sbr.rel (%p170_p2) target bundleno = 768 (0x300), region = 36 }
   0x7   : > { %s199_s18 = smul.u32 (!%p170_p2), 176, %s2062_s16  ;;  %p195_p3 = scmp.lt.s32.totalorder (!%p170_p2), %s194_s17, 43 }
   0x9   : > { %p200_p4 = scmp.lt.s32.totalorder (!%p170_p2), %s199_s18, 703 }
   0xb   : > { %s2263_s17 = smov (!%p195_p3, %s194_s17), 43  ;;  %s2265_s18 = smov (!%p200_p4, %s199_s18), 703 }
   0xc   : > { %s2071_s21 = scalar_lea.vmem %s2257_s0, %s2263_s17  ;;  %s1537_s22 = sshll.u32 %s2265_s18, 2 }
   0xd   : > { %s2076_s25 = scalar_lea.vmem %s2258_s1, %s1537_s22  ;;  %209 = sbr.rel (%p1538_p5) target bundleno = 20 (0x14), region = 40 }
  0x12   : > { %v2024_v0 = vmov 0.0  }
  0x13   : > { %210 = vst [vmem:[#allocation2] sm:$0x3] %v2024_v0 }
  0x14 PF: > { %v1883_v1 = vld [vmem:[%s2076_s25 + $0x78] sm:$0xff]   ;;  %v1887_v5 = vld [vmem:[%s2076_s25 + $0x70] sm:$0xff]   ;;  %v1891_v9 = vld [vmem:[%s2076_s25 + $0x68] sm:$0xff]   ;;  %v396_v29 = vlaneseq  ;;  %v2025_v37 = vmov 1966171168   ;;  %vm2027_vm0 = vmmov 0  }
  0x15   : > { %v1884_v2 = vld [vmem:[%s2076_s25 + $0xf8] sm:$0xff]   ;;  %1665 = vmatprep.subr.bf16.mxu0 %v1883_v1  ;;  %v1888_v6 = vld [vmem:[%s2076_s25 + $0xf0] sm:$0xff]   ;;  %v1892_v10 = vld [vmem:[%s2076_s25 + $0xe8] sm:$0xff]   ;;  %v394_v38 = vunpack.c.l.s4 %v2025_v37  ;;  %p1628_p6 = scmp.ne.s32.totalorder %s2062_s16, 3 }
  0x16   : > { %v1885_v3 = vld [vmem:[%s2076_s25 + $0x38] sm:$0xff]   ;;  %1687 = vmatprep.subr.bf16.mxu1 %v1884_v2  ;;  %v1889_v7 = vld [vmem:[%s2076_s25 + $0x30] sm:$0xff]   ;;  %v1893_v11 = vld [vmem:[%s2076_s25 + $0x28] sm:$0xff]   ;;  %v2111_v34 = vshrl.u32 %v396_v29, 7 }
  0x17   : > { %v1886_v4 = vld [vmem:[%s2076_s25 + $0xb8] sm:$0xff]   ;;  %1666 = vmatpush3.bf16.msra.mxu0 %v1885_v3  ;;  %v1890_v8 = vld [vmem:[%s2076_s25 + $0xb0] sm:$0xff]   ;;  %v1894_v12 = vld [vmem:[%s2076_s25 + $0xa8] sm:$0xff]   ;;  %v395_v41 = vunpack.c.0.s8 %v394_v38 }
  0x18   : > { %1688 = vmatpush3.bf16.msra.mxu1 %v1886_v4  ;;  %1667 = vmatprep.subr.bf16.mxu0 %v1887_v5  ;;  %v1895_v13 = vld [vmem:[%s2076_s25 + $0x60] sm:$0xff]   ;;  %v1899_v17 = vld [vmem:[%s2076_s25 + $0x58] sm:$0xff]   ;;  %v1903_v21 = vld [vmem:[%s2076_s25 + $0x50] sm:$0xff]  }
  0x19   : > { %1689 = vmatprep.subr.bf16.mxu1 %v1888_v6  ;;  %v1896_v14 = vld [vmem:[%s2076_s25 + $0xe0] sm:$0xff]   ;;  %v1900_v18 = vld [vmem:[%s2076_s25 + $0xd8] sm:$0xff]   ;;  %v1904_v22 = vld [vmem:[%s2076_s25 + $0xd0] sm:$0xff]   ;;  %v2117_v42 = vsub.s32 %v395_v41, %v2111_v34 }
  0x1a   : > { %v1897_v15 = vld [vmem:[%s2076_s25 + $0x20] sm:$0xff]   ;;  %v1901_v19 = vld [vmem:[%s2076_s25 + $0x18] sm:$0xff]   ;;  %v1905_v23 = vld [vmem:[%s2076_s25 + $0x10] sm:$0xff]  }
  0x1b   : > { %1668 = vmatpush3.bf16.msra.mxu0 %v1889_v7  ;;  %v1898_v16 = vld [vmem:[%s2076_s25 + $0xa0] sm:$0xff]   ;;  %v1902_v20 = vld [vmem:[%s2076_s25 + $0x98] sm:$0xff]   ;;  %v1906_v24 = vld [vmem:[%s2076_s25 + $0x90] sm:$0xff]  }
  0x1c   : > { %1690 = vmatpush3.bf16.msra.mxu1 %v1890_v8  ;;  %1669 = vmatprep.subr.bf16.mxu0 %v1891_v9  ;;  %v1907_v25 = vld [vmem:[%s2076_s25 + $0x48] sm:$0xff]   ;;  %v1911_v30 = vld [vmem:[%s2076_s25 + $0x40] sm:$0xff]   ;;  %v1916_v36 = vld [vmem:[%s2076_s25 + $0x178] sm:$0xff]  }
  0x1d   : > { %1691 = vmatprep.subr.bf16.mxu1 %v1892_v10  ;;  %v1908_v26 = vld [vmem:[%s2076_s25 + $0xc8] sm:$0xff]   ;;  %v1912_v31 = vld [vmem:[%s2076_s25 + $0xc0] sm:$0xff]   ;;  %v1917_v39 = vld [vmem:[%s2076_s25 + $0x1f8] sm:$0xff]  }
  0x1e   : > { %v1909_v27 = vld [vmem:[%s2076_s25 + $0x8] sm:$0xff]   ;;  %v1913_v32 = vld [vmem:[%s2076_s25] sm:$0xff]   ;;  %v1918_v49 = vld [vmem:[%s2076_s25 + $0x138] sm:$0xff]  }
  0x1f   : > { %1670 = vmatpush3.bf16.msra.mxu0 %v1893_v11  ;;  %v1910_v28 = vld [vmem:[%s2076_s25 + $0x88] sm:$0xff]   ;;  %v1914_v33 = vld [vmem:[%s2076_s25 + $0x80] sm:$0xff]   ;;  %v1920_v52 = vld [vmem:[%s2076_s25 + $0x170] sm:$0xff]  }
  0x20   : > { %1692 = vmatpush3.bf16.msra.mxu1 %v1894_v12  ;;  %1671 = vmatprep.subr.bf16.mxu0 %v1895_v13  ;;  %v212_v35 = vld [vmem:[%s2071_s21] sm:$0xff]  ;;  %v1919_v54 = vld [vmem:[%s2076_s25 + $0x1b8] sm:$0xff]   ;;  %v1921_v55 = vld [vmem:[%s2076_s25 + $0x1f0] sm:$0xff]  }
  0x21   : > { %1693 = vmatprep.subr.bf16.mxu1 %v1896_v14  ;;  %v392_v40 = vcombine.high %v212_v35, %v212_v35  ;;  %v399_v43 = vrot.slane %v212_v35, %v2117_v42  ;;  %v1922_v57 = vld [vmem:[%s2076_s25 + $0x130] sm:$0xff]   ;;  %v1924_v58 = vld [vmem:[%s2076_s25 + $0x168] sm:$0xff]   ;;  %v1928_v62 = vld [vmem:[%s2076_s25 + $0x160] sm:$0xff]  }
  0x22   : > { %v1923_v59 = vld [vmem:[%s2076_s25 + $0x1b0] sm:$0xff]   ;;  %v1925_v60 = vld [vmem:[%s2076_s25 + $0x1e8] sm:$0xff]   ;;  %v1929_v0 = vld [vmem:[%s2076_s25 + $0x1e0] sm:$0xff]  }
  0x23   : > { %1672 = vmatpush3.bf16.msra.mxu0 %v1897_v15  ;;  %v2121_v44 = vrot.slane %v392_v40, %v2117_v42  ;;  %v407_v45 = vcombine.high %v399_v43, %v399_v43  ;;  %v415_v46 = vrot.slane %v399_v43, %v2117_v42  ;;  %v1926_v61 = vld [vmem:[%s2076_s25 + $0x128] sm:$0xff]   ;;  %v1930_v1 = vld [vmem:[%s2076_s25 + $0x120] sm:$0xff]   ;;  %v1932_v2 = vld [vmem:[%s2076_s25 + $0x158] sm:$0xff]  }
  0x24   : > { %1694 = vmatpush3.bf16.msra.mxu1 %v1898_v16  ;;  %1673 = vmatprep.subr.bf16.mxu0 %v1899_v17  ;;  %v1927_v63 = vld [vmem:[%s2076_s25 + $0x1a8] sm:$0xff]   ;;  %v1931_v3 = vld [vmem:[%s2076_s25 + $0x1a0] sm:$0xff]   ;;  %v1933_v4 = vld [vmem:[%s2076_s25 + $0x1d8] sm:$0xff]  }
  0x25   : > { %1695 = vmatprep.subr.bf16.mxu1 %v1900_v18  ;;  %v408_v47 = vcombine.high %v2121_v44, %v2121_v44  ;;  %v429_v48 = vrot.slane %v407_v45, %v2117_v42  ;;  %v437_v51 = vcombine.high %v415_v46, %v415_v46  ;;  %v1934_v5 = vld [vmem:[%s2076_s25 + $0x118] sm:$0xff]   ;;  %v1936_v6 = vld [vmem:[%s2076_s25 + $0x150] sm:$0xff]   ;;  %v1940_v10 = vld [vmem:[%s2076_s25 + $0x148] sm:$0xff]   ;;  %v422_v18 = vrot.slane %v2121_v44, %v2117_v42 }
  0x26   : > { %v1935_v7 = vld [vmem:[%s2076_s25 + $0x198] sm:$0xff]   ;;  %v1937_v8 = vld [vmem:[%s2076_s25 + $0x1d0] sm:$0xff]   ;;  %v1941_v12 = vld [vmem:[%s2076_s25 + $0x1c8] sm:$0xff]  }
  0x27   : > { %1674 = vmatpush3.bf16.msra.mxu0 %v1901_v19  ;;  %v436_v50 = vrot.slane %v408_v47, %v2117_v42  ;;  %1035 = vmatprep.mubr.bf16.mxu0 %v429_v48  ;;  %v439_v53 = vcombine.high %v429_v48, %v429_v48  ;;  %v1938_v9 = vld [vmem:[%s2076_s25 + $0x110] sm:$0xff]   ;;  %v1942_v13 = vld [vmem:[%s2076_s25 + $0x108] sm:$0xff]   ;;  %v1944_v14 = vld [vmem:[%s2076_s25 + $0x140] sm:$0xff]  }
  0x28   : > { %1696 = vmatpush3.bf16.msra.mxu1 %v1902_v20  ;;  %1675 = vmatprep.subr.bf16.mxu0 %v1903_v21  ;;  %v1939_v11 = vld [vmem:[%s2076_s25 + $0x190] sm:$0xff]   ;;  %v1943_v15 = vld [vmem:[%s2076_s25 + $0x188] sm:$0xff]   ;;  %v1945_v16 = vld [vmem:[%s2076_s25 + $0x1c0] sm:$0xff]  }
  0x29   : > { %1697 = vmatprep.subr.bf16.mxu1 %v1904_v22  ;;  %v440_v56 = vcombine.high %v436_v50, %v436_v50  ;;  %1075 = vmatprep.mubr.bf16.mxu1 %v439_v53  ;;  %v1946_v17 = vld [vmem:[%s2076_s25 + $0x100] sm:$0xff]   ;;  %v1948_v19 = vld [vmem:[%s2076_s25 + $0x278] sm:$0xff]   ;;  %v438_v22 = vcombine.high %v422_v18, %v422_v18  ;;  %v1955_v29 = vld [vmem:[%s2076_s25 + $0x228] sm:$0xff]  }
  0x2a   : > { %v1947_v20 = vld [vmem:[%s2076_s25 + $0x180] sm:$0xff]   ;;  %v1949_v21 = vld [vmem:[%s2076_s25 + $0x238] sm:$0xff]   ;;  %v1539_v35 = vld.sshfl [vmem:[%s2071_s21 + $0x8] sm:$0x13 pattern:$0x75316420] }
  0x2b   : > { %1676 = vmatpush3.bf16.msra.mxu0 %v1905_v23  ;;  %v1951_v23 = vld [vmem:[%s2076_s25 + $0x270] sm:$0xff]   ;;  %v448_v37 = vcombine.high %v1539_v35, %v1539_v35  ;;  %v1961_v38 = vld [vmem:[%s2076_s25 + $0x218] sm:$0xff]   ;;  %v1966_v44 = vld [vmem:[%s2076_s25 + $0x248] sm:$0xff]  }
  0x2c   : > { %1698 = vmatpush3.bf16.msra.mxu1 %v1906_v24  ;;  %1677 = vmatprep.subr.bf16.mxu0 %v1907_v25  ;;  %v1950_v24 = vld [vmem:[%s2076_s25 + $0x2b8] sm:$0xff]   ;;  %v2026_v25 = vmov 0.0   ;;  %v1963_v40 = vld [vmem:[%s2076_s25 + $0x250] sm:$0xff]   ;;  %v1969_v47 = vld [vmem:[%s2076_s25 + $0x240] sm:$0xff]  }
  0x2d   : > { %1699 = vmatprep.subr.bf16.mxu1 %v1908_v26  ;;  %v1952_v26 = vld [vmem:[%s2076_s25 + $0x230] sm:$0xff]   ;;  %v1962_v41 = vld [vmem:[%s2076_s25 + $0x298] sm:$0xff]   ;;  %v1968_v48 = vld [vmem:[%s2076_s25 + $0x288] sm:$0xff]  }
  0x2e   : > { %v1964_v43 = vld [vmem:[%s2076_s25 + $0x210] sm:$0xff]  }
  0x2f   : > { %1678 = vmatpush3.bf16.msra.mxu0 %v1909_v27  ;;  %v1954_v27 = vld [vmem:[%s2076_s25 + $0x268] sm:$0xff]   ;;  %v1965_v45 = vld [vmem:[%s2076_s25 + $0x290] sm:$0xff]  }
  0x30   : > { %1700 = vmatpush3.bf16.msra.mxu1 %v1910_v28  ;;  %1679 = vmatprep.subr.bf16.mxu0 %v1911_v30  ;;  %v1953_v28 = vld [vmem:[%s2076_s25 + $0x2b0] sm:$0xff]   ;;  %v1957_v30 = vld [vmem:[%s2076_s25 + $0x260] sm:$0xff]  }
  0x31   : > { %1701 = vmatprep.subr.bf16.mxu1 %v1912_v31  ;;  %v1956_v31 = vld [vmem:[%s2076_s25 + $0x2a8] sm:$0xff]  }
  0x33   : > { %1680 = vmatpush3.bf16.msra.mxu0 %v1913_v32  ;;  %v1958_v32 = vld [vmem:[%s2076_s25 + $0x220] sm:$0xff]  }
  0x34   : > { %1702 = vmatpush3.bf16.msra.mxu1 %v1914_v33  ;;  %1709 = vmatprep.subr.bf16.mxu0 %v1916_v36  ;;  %v1960_v33 = vld [vmem:[%s2076_s25 + $0x258] sm:$0xff]   ;;  %v1959_v36 = vld [vmem:[%s2076_s25 + $0x2a0] sm:$0xff]  }
  0x35   : > { %1731 = vmatprep.subr.bf16.mxu1 %v1917_v39  ;;  %v462_v39 = vrot.slane %v448_v37, %v2117_v42 }
  0x36   : > { %1036 = vmatmul.mubr.bf16.vlgmr.msra.gmra.mxu0 %v415_v46  ;;  %v1967_v46 = vld [vmem:[%s2076_s25 + $0x208] sm:$0xff]  }
  0x37   : > { %1710 = vmatpush3.bf16.msra.mxu0 %v1918_v49  ;;  %1076 = vmatmul.mubr.bf16.vlgmr.msra.gmra.mxu1 %v437_v51  ;;  %v1970_v49 = vld [vmem:[%s2076_s25 + $0x200] sm:$0xff]  }
  0x38   : > { %1711 = vmatprep.subr.bf16.mxu0 %v1920_v52  ;;  %1732 = vmatpush3.bf16.msra.mxu1 %v1919_v54  ;;  %v1971_v51 = vld [vmem:[%s2076_s25 + $0x280] sm:$0xff]  }
  0x39   : > { %1115 = vmatprep.mubr.bf16.mxu0 %v436_v50  ;;  %1733 = vmatprep.subr.bf16.mxu1 %v1921_v55  ;;  %v455_v50 = vrot.slane %v1539_v35, %v2117_v42 }
  0x3a   : > { %1155 = vmatprep.mubr.bf16.mxu1 %v440_v56 }
  0x3b   : > { %1712 = vmatpush3.bf16.msra.mxu0 %v1922_v57  ;;  %v463_v52 = vcombine.high %v455_v50, %v455_v50 }
  0x3c   : > { %1713 = vmatprep.subr.bf16.mxu0 %v1924_v58  ;;  %1734 = vmatpush3.bf16.msra.mxu1 %v1923_v59 }
  0x3d   : > { %1735 = vmatprep.subr.bf16.mxu1 %v1925_v60 }
  0x3f   : > { %1714 = vmatpush3.bf16.msra.mxu0 %v1926_v61 }
  0x40   : > { %1715 = vmatprep.subr.bf16.mxu0 %v1928_v62  ;;  %1736 = vmatpush3.bf16.msra.mxu1 %v1927_v63 }
  0x41   : > { %1737 = vmatprep.subr.bf16.mxu1 %v1929_v0 }
  0x43   : > { %1716 = vmatpush3.bf16.msra.mxu0 %v1930_v1 }
  0x44   : > { %1717 = vmatprep.subr.bf16.mxu0 %v1932_v2  ;;  %1738 = vmatpush3.bf16.msra.mxu1 %v1931_v3 }
  0x45   : > { %1739 = vmatprep.subr.bf16.mxu1 %v1933_v4 }
  0x47   : > { %1718 = vmatpush3.bf16.msra.mxu0 %v1934_v5 }
  0x48   : > { %1719 = vmatprep.subr.bf16.mxu0 %v1936_v6  ;;  %1740 = vmatpush3.bf16.msra.mxu1 %v1935_v7 }
  0x49   : > { %1741 = vmatprep.subr.bf16.mxu1 %v1937_v8 }
  0x4b   : > { %1720 = vmatpush3.bf16.msra.mxu0 %v1938_v9 }
  0x4c   : > { %1721 = vmatprep.subr.bf16.mxu0 %v1940_v10  ;;  %1742 = vmatpush3.bf16.msra.mxu1 %v1939_v11 }
  0x4d   : > { %1743 = vmatprep.subr.bf16.mxu1 %v1941_v12 }
  0x4f   : > { %1722 = vmatpush3.bf16.msra.mxu0 %v1942_v13 }
  0x50   : > { %1723 = vmatprep.subr.bf16.mxu0 %v1944_v14  ;;  %1744 = vmatpush3.bf16.msra.mxu1 %v1943_v15 }
  0x51   : > { %1745 = vmatprep.subr.bf16.mxu1 %v1945_v16 }
  0x53   : > { %1724 = vmatpush3.bf16.msra.mxu0 %v1946_v17 }
  0x54   : > { %1753 = vmatprep.subr.bf16.mxu0 %v1948_v19  ;;  %1746 = vmatpush3.bf16.msra.mxu1 %v1947_v20 }
  0x55   : > { %1802 = vmatprep.subr.bf16.mxu1 %v2026_v25 }
  0x56   : > { %1116 = vmatmul.mubr.bf16.vlgmr.msra.gmra.mxu0 %v422_v18  ;;  %v211_v18 = vld [vmem:[#allocation2] sm:$0x3] }
  0x57   : > { %1754 = vmatpush3.bf16.msra.mxu0 %v1949_v21  ;;  %1156 = vmatmul.mubr.bf16.vlgmr.msra.gmra.mxu1 %v438_v22 }
  0x58   : > { %1755 = vmatprep.subr.bf16.mxu0 %v1951_v23  ;;  %1803 = vmatpush3.bf16.msra.mxu1 %v1950_v24 }
  0x59   : > { %1818 = vmatprep.mubr.msk.bf16.mxu1 %vm2027_vm0, %v2026_v25  ;;  %1804 = vmatprep.subr.bf16.mxu1 %v2026_v25 }
  0x5a   : > { %1195 = vmatprep.mubr.bf16.mxu0 %v462_v39 }
  0x5b   : > { %1756 = vmatpush3.bf16.msra.mxu0 %v1952_v26 }
  0x5c   : > { %1757 = vmatprep.subr.bf16.mxu0 %v1954_v27  ;;  %1805 = vmatpush3.bf16.msra.mxu1 %v1953_v28 }
  0x5d   : > { %1806 = vmatprep.subr.bf16.mxu1 %v2026_v25 }
  0x5f   : > { %1758 = vmatpush3.bf16.msra.mxu0 %v1955_v29 }
  0x60   : > { %1759 = vmatprep.subr.bf16.mxu0 %v1957_v30  ;;  %1807 = vmatpush3.bf16.msra.mxu1 %v1956_v31 }
  0x61   : > { %1808 = vmatprep.subr.bf16.mxu1 %v2026_v25 }
  0x63   : > { %1760 = vmatpush3.bf16.msra.mxu0 %v1958_v32 }
  0x64   : > { %1761 = vmatprep.subr.bf16.mxu0 %v1960_v33  ;;  %1809 = vmatpush3.bf16.msra.mxu1 %v1959_v36 }
  0x65   : > { %1810 = vmatprep.subr.bf16.mxu1 %v2026_v25 }
  0x67   : > { %1762 = vmatpush3.bf16.msra.mxu0 %v1961_v38 }
  0x68   : > { %1763 = vmatprep.subr.bf16.mxu0 %v1963_v40  ;;  %1811 = vmatpush3.bf16.msra.mxu1 %v1962_v41 }
  0x69   : > { %1812 = vmatprep.subr.bf16.mxu1 %v2026_v25 }
  0x6b   : > { %1764 = vmatpush3.bf16.msra.mxu0 %v1964_v43 }
  0x6c   : > { %1765 = vmatprep.subr.bf16.mxu0 %v1966_v44  ;;  %1813 = vmatpush3.bf16.msra.mxu1 %v1965_v45 }
  0x6d   : > { %1814 = vmatprep.subr.bf16.mxu1 %v2026_v25 }
  0x6f   : > { %1766 = vmatpush3.bf16.msra.mxu0 %v1967_v46 }
  0x70   : > { %1767 = vmatprep.subr.bf16.mxu0 %v1969_v47  ;;  %1815 = vmatpush3.bf16.msra.mxu1 %v1968_v48 }
  0x71   : > { %1816 = vmatprep.subr.bf16.mxu1 %v2026_v25 }
  0x73   : > { %1768 = vmatpush3.bf16.msra.mxu0 %v1970_v49 }
  0x74   : > { %1817 = vmatpush3.bf16.msra.mxu1 %v1971_v51 }
  0x76   : > { %1196 = vmatmul.mubr.bf16.vlgmr.msra.gmra.mxu0 %v455_v50 }
  0x77   : > { %1819 = vmatmul.mubr.bf16.vlgmr.msra.gmra.mxu1 %v463_v52 }
  0xf6   : > { %v1681_v53 = vpop.f32.mrf.mxu0 }
  0xf7   : > { %v1703_v54 = vpop.f32.mrf.mxu1 }
  0xf8   : > { %v1682_v55 = vpop.f32.mrf.mxu0 }
  0xf9   : > { %v1704_v56 = vpop.f32.mrf.mxu1  ;;  %v1683_v4 = vadd.f32 %v1682_v55, %v1681_v53 }
  0xfa   : > { %v1684_v57 = vpop.f32.mrf.mxu0  ;;  %v1705_v5 = vadd.f32 %v1704_v56, %v1703_v54 }
  0xfb   : > { %v1706_v58 = vpop.f32.mrf.mxu1 }
  0xfc   : > { %v1685_v59 = vpop.f32.mrf.mxu0  ;;  %v1078_v7 = vadd.f32 %v1705_v5, %v1683_v4 }
  0xfd   : > { %v1707_v60 = vpop.f32.mrf.mxu1 }
 0x116   : > { %v1725_v61 = vpop.f32.mrf.mxu0 }
 0x117   : > { %v1747_v62 = vpop.f32.mrf.mxu1 }
 0x118   : > { %v1726_v63 = vpop.f32.mrf.mxu0 }
 0x119   : > { %v1748_v42 = vpop.f32.mrf.mxu1  ;;  %v1727_v6 = vadd.f32 %v1726_v63, %v1725_v61 }
 0x11a   : > { %v1728_v0 = vpop.f32.mrf.mxu0  ;;  %v1749_v9 = vadd.f32 %v1748_v42, %v1747_v62 }
 0x11b   : > { %v1750_v1 = vpop.f32.mrf.mxu1  ;;  %v1118_v8 = vadd.f32 %v1727_v6, %v1078_v7 }
 0x11c   : > { %v1729_v2 = vpop.f32.mrf.mxu0 }
 0x11d   : > { %v1751_v3 = vpop.f32.mrf.mxu1  ;;  %v1158_v13 = vadd.f32 %v1749_v9, %v1118_v8 }
 0x136   : > { %v1769_v10 = vpop.f32.mrf.mxu0 }
 0x137   : > { %v1237_v11 = vpop.f32.mrf.mxu1 }
 0x138   : > { %v1770_v12 = vpop.f32.mrf.mxu0 }
 0x139   : > { %v1771_v14 = vadd.f32 %v1770_v12, %v1769_v10  ;;  %v1820_v15 = vpop.f32.mrf.mxu1 }
 0x13a   : > { %v1772_v16 = vpop.f32.mrf.mxu0 }
 0x13b   : > { %v1198_v17 = vadd.f32 %v1771_v14, %v1158_v13  ;;  %v1240_v19 = vpop.f32.mrf.mxu1 }
 0x13c   : > { %v1773_v20 = vpop.f32.mrf.mxu0 }
 0x13d   : > { %v1238_v21 = vadd.f32 %v1237_v11, %v1198_v17  ;;  %v1821_v22 = vpop.f32.mrf.mxu1  ;;  %1248 = sbr.rel (%p1628_p6) target bundleno = 753 (0x2f1), region = 44 }
 0x13f   : > { %v1243_v23 = vadd.f32 %v1238_v21, %v211_v18 }
 0x141   : > { %1244 = vst [vmem:[#allocation2] sm:$0x3] %v1243_v23 }
 0x142   : > { %v1972_v24 = vld [vmem:[%s2260_s3 + $0x38] sm:$0xff]   ;;  %v2028_v25 = vmov 0.0   ;;  %v1973_v26 = vld [vmem:[%s2260_s3 + $0x30] sm:$0xff]   ;;  %vm2029_vm1 = vmmov 0   ;;  %v1974_v27 = vld [vmem:[%s2260_s3 + $0x28] sm:$0xff]   ;;  %v1253_v32 = vsub.s32 0, %v2111_v34 }
 0x143   : > { %1822 = vmatprep.subr.bf16.mxu0 %v2028_v25  ;;  %1842 = vmatprep.subr.bf16.mxu1 %v2028_v25  ;;  %v1980_v28 = vld [vmem:[%s2260_s3 + $0x78] sm:$0xff]   ;;  %v1975_v29 = vld [vmem:[%s2260_s3 + $0x20] sm:$0xff]   ;;  %v1981_v30 = vld [vmem:[%s2260_s3 + $0x70] sm:$0xff]   ;;  %v1276_v50 = vsub.s32 1, %v2111_v34  ;;  %v1387_v59 = vsub.s32 2, %v2111_v34 }
 0x144   : > { %1823 = vmatpush3.bf16.msra.mxu0 %v1972_v24  ;;  %1838 = vmatprep.mubr.msk.bf16.mxu0 %vm2029_vm1, %v2028_v25  ;;  %v1976_v31 = vld [vmem:[%s2260_s3 + $0x18] sm:$0xff]   ;;  %v1249_v33 = vld [vmem:[%s2259_s2] sm:$0x7]  ;;  %v1982_v35 = vld [vmem:[%s2260_s3 + $0x68] sm:$0xff]  }
 0x145   : > { %1824 = vmatprep.subr.bf16.mxu0 %v2028_v25  ;;  %1858 = vmatprep.mubr.msk.bf16.mxu1 %vm2029_vm1, %v2028_v25  ;;  %v1254_v36 = vrot.slane %v1249_v33, %v1253_v32  ;;  %v1977_v37 = vld [vmem:[%s2260_s3 + $0x10] sm:$0xff]   ;;  %v1983_v39 = vld [vmem:[%s2260_s3 + $0x60] sm:$0xff]   ;;  %v1978_v41 = vld [vmem:[%s2260_s3 + $0x8] sm:$0xff]   ;;  %v1277_v51 = vrot.slane %v1249_v33, %v1276_v50  ;;  %v1388_v60 = vrot.slane %v1249_v33, %v1387_v59 }
 0x146   : > { %1843 = vmatpush3.bf16.msra.mxu1 %v1980_v28  ;;  %v1984_v43 = vld [vmem:[%s2260_s3 + $0x58] sm:$0xff]   ;;  %v1979_v45 = vld [vmem:[%s2260_s3] sm:$0xff]   ;;  %v1985_v46 = vld [vmem:[%s2260_s3 + $0x50] sm:$0xff]  }
 0x147   : > { %1844 = vmatprep.subr.bf16.mxu1 %v2028_v25  ;;  %v1986_v48 = vld [vmem:[%s2260_s3 + $0x48] sm:$0xff]   ;;  %v1987_v49 = vld [vmem:[%s2260_s3 + $0x40] sm:$0xff]  }
 0x148   : > { %1825 = vmatpush3.bf16.msra.mxu0 %v1973_v26  ;;  %v1250_v38 = vld [vmem:[#allocation2] sm:$0x3] }
 0x149   : > { %1826 = vmatprep.subr.bf16.mxu0 %v2028_v25  ;;  %v1255_v40 = vadd.f32 %v1254_v36, %v1250_v38 }
 0x14a   : > { %1845 = vmatpush3.bf16.msra.mxu1 %v1981_v30 }
 0x14b   : > { %1846 = vmatprep.subr.bf16.mxu1 %v2028_v25  ;;  %v1256_v44 = vmax.f32 %v1255_v40, 0.0 }
 0x14c   : > { %1827 = vmatpush3.bf16.msra.mxu0 %v1974_v27 }
 0x14d   : > { %1828 = vmatprep.subr.bf16.mxu0 %v2028_v25  ;;  %v1257_v47 = vpack.c.bf16 %v1256_v44, %v1256_v44 }
 0x14e   : > { %1847 = vmatpush3.bf16.msra.mxu1 %v1982_v35 }
 0x14f   : > { %1848 = vmatprep.subr.bf16.mxu1 %v2028_v25 }
 0x150   : > { %1829 = vmatpush3.bf16.msra.mxu0 %v1975_v29 }
 0x151   : > { %1830 = vmatprep.subr.bf16.mxu0 %v2028_v25 }
 0x152   : > { %1849 = vmatpush3.bf16.msra.mxu1 %v1983_v39 }
 0x153   : > { %1850 = vmatprep.subr.bf16.mxu1 %v2028_v25 }
 0x154   : > { %1831 = vmatpush3.bf16.msra.mxu0 %v1976_v31 }
 0x155   : > { %1832 = vmatprep.subr.bf16.mxu0 %v2028_v25 }
 0x156   : > { %1851 = vmatpush3.bf16.msra.mxu1 %v1984_v43 }
 0x157   : > { %1852 = vmatprep.subr.bf16.mxu1 %v2028_v25 }
 0x158   : > { %1833 = vmatpush3.bf16.msra.mxu0 %v1977_v37 }
 0x159   : > { %1834 = vmatprep.subr.bf16.mxu0 %v2028_v25 }
 0x15a   : > { %1853 = vmatpush3.bf16.msra.mxu1 %v1985_v46 }
 0x15b   : > { %1854 = vmatprep.subr.bf16.mxu1 %v2028_v25 }
 0x15c   : > { %1835 = vmatpush3.bf16.msra.mxu0 %v1978_v41 }
 0x15d   : > { %1836 = vmatprep.subr.bf16.mxu0 %v2028_v25 }
 0x15e   : > { %1855 = vmatpush3.bf16.msra.mxu1 %v1986_v48 }
 0x15f   : > { %1856 = vmatprep.subr.bf16.mxu1 %v2028_v25 }
 0x160   : > { %1837 = vmatpush3.bf16.msra.mxu0 %v1979_v45 }
 0x162   : > { %1857 = vmatpush3.bf16.msra.mxu1 %v1987_v49 }
 0x163   : > { %1839 = vmatmul.mubr.bf16.vlgmr.msra.gmra.mxu0 %v1257_v47 }
 0x223   : > { %v1360_v52 = vpop.f32.mrf.mxu0 }
 0x224   : > { %v1361_v53 = vadd.f32 %v1360_v52, %v1277_v51 }
 0x225   : > { %v1840_v54 = vpop.f32.mrf.mxu0 }
 0x226   : > { %v1366_v55 = vmax.f32 %v1361_v53, 0.0 }
 0x227   : > { %v1363_v56 = vpop.f32.mrf.mxu0 }
 0x228   : > { %v1367_v57 = vpack.c.bf16 %v1366_v55, %v1366_v55 }
 0x229   : > { %v1841_v58 = vpop.f32.mrf.mxu0 }
 0x22a   : > { %1859 = vmatmul.mubr.bf16.vlgmr.msra.gmra.mxu1 %v1367_v57 }
 0x2ea   : > { %v1471_v61 = vpop.f32.mrf.mxu1 }
 0x2eb   : > { %v1472_v62 = vadd.f32 %v1471_v61, %v1388_v60 }
 0x2ec   : > { %v1860_v63 = vpop.f32.mrf.mxu1 }
 0x2ed   : > { %1477 = vst [vmem:[#allocation3] sm:$0x3] %v1472_v62 }
 0x2ee   : > { %v1474_v42 = vpop.f32.mrf.mxu1 }
 0x2f0   : > { %v1861_v0 = vpop.f32.mrf.mxu1 }
 0x2f1 PF: > { %p1866_p7 = scmp.eq.s32.totalorder %s2062_s16, 3  ;;  %s2030_s10 = smov [#allocation3]  }
 0x2f2   : > { %s1485_s11 = sshll.u32 %s2030_s10, 4  ;;  %s1486_s11 = int_to_ptr.vmem [resolvable:$true] %s1485_s11 }
 0x2f3   : > { %s1988_s12 = scalar_lea.vmem %s1486_s11, 32  ;;  %p1995_p11 = scmp.lt.s32.totalorder %s1486_s11, %s1486_s11 }
 0x2f4   : > { %p1989_p8 = scmp.ne.s32.totalorder %s1486_s11, %s1988_s12  ;;  %p1996_p12 = scmp.lt.s32.totalorder %s1988_s12, %s1988_s12 }
 0x2f6   : > { %p1990_p9 = pnand %p1989_p8, %p1866_p7  ;;  %p1997_p13 = por %p1996_p12, %p1995_p11 }
 0x2f8   : > { %p1991_p10 = pneg %p1990_p9 }
 0x2fa   : > { %p1998_p0 = pnand %p1997_p13, %p1991_p10 }
 0x2fc   : > { %2001 = shalt.err (!%p1998_p0)
}
 0x2fd   : > { %1863 = dma.vmem_to_hbm [thread:$0]  (%p1866_p7), %s1486_s11, 32, %s2261_s4, [#allocation4]  }
 0x2fe   : > { %2017 = dma.done.wait (%p1866_p7), [#allocation4], 32  }
 0x2ff   : > { %2019 = vsyncadd (%p1866_p7), [#allocation4], 4294967264 }
 0x300 PF: > { %s15_s15 = sadd.s32 1, %s2022_s15  }
 0x301   : > { %p12_p1 = scmp.ge.s32.totalorder %s15_s15, 6  }
 0x303   :  { %14 = sbr.rel (!%p12_p1) target bundleno = 1 (0x1), region = 75 }
 0x308   :  { %1498 = vsyncpa [#allocation4], 1 }
 0x309   :  { %1500 = vsyncpa [#allocation4 + $0x1], 1 }

</bundles_post_ra>
